<compile_context>
chip_gen: v5e
topology: v5e:2x2
jax: 0.10.0
libtpu: 0.0.40
codegen_flags: <defaults>
</compile_context>

<pallas_src>
import functools

import jax
import jax.numpy as jnp
from jax.experimental import pallas as pl
from jax.experimental.pallas import tpu as pltpu

BN_EPS = 1e-5


# ---------------------------------------------------------------------------
# Per-generation VMEM budgets
# ---------------------------------------------------------------------------
@functools.lru_cache(maxsize=1)
def _budgets():
    cap = 64 * 2**20
    try:
        info = pltpu.get_tpu_info()
        cap = int(getattr(info, "vmem_capacity_bytes", cap))
    except Exception:
        pass
    if cap >= 100 * 2**20:          # v5e / v6e: 128 MiB physical VMEM
        return {"weight": 18 * 2**20, "lhs": 16 * 2**20, "vmem": 100 * 2**20}
    # v7x (64 MiB physical) or unknown: conservative
    return {"weight": 6 * 2**20, "lhs": 8 * 2**20, "vmem": 40 * 2**20}


# ---------------------------------------------------------------------------
# Tile helpers
# ---------------------------------------------------------------------------
def _round_up(x, m):
    return ((x + m - 1) // m) * m


def _pad_wp(w):
    # padded width: >= W+2 and a multiple of 8 (sublane-aligned tap offsets)
    return _round_up(w + 2, 8)


def _pick_kc_tiles(kf, cout, weight_budget):
    """(tK, tCout) for the folded weight (3, kf, cout); bf16 tile <= budget."""
    cout_cands = [cout] + [d for d in (512, 256, 128) if cout % d == 0 and d < cout]
    if kf % 128 == 0:
        k_cands = [d for d in range(kf, 127, -128) if kf % d == 0]
    else:
        k_cands = [kf]
    for tc in cout_cands:
        for tk in k_cands:
            if 3 * tk * tc * 2 <= weight_budget:
                return tk, tc
    return k_cands[-1], cout_cands[-1]


def _pick_tm(r, wp, tk, lhs_budget):
    """Row-tile size: multiple of 8, low dead-row waste, bounded LHS window."""
    if r <= 1024:
        return _round_up(r, 8)
    tm = None
    for cand in (1024, 512, 256):
        if (_round_up(r, cand) - r) * 8 <= r:     # <= 12.5% dead rows
            tm = cand
            break
    if tm is None:
        tm = min((_round_up(r, c) - r, c) for c in (1024, 512, 256))[1]
    while tm > 256 and 2 * (tm + 2 * wp) * tk * 2 > lhs_budget:
        tm //= 2
    return tm


# ---------------------------------------------------------------------------
# kx-folded implicit-GEMM 3x3 conv + folded BN + ReLU (one pallas_call each)
# ---------------------------------------------------------------------------
def conv3x3_bn_relu(x, w, b, *, relu=True, geom=None, out_flat=False):
    """Conv2d(3x3, padding=1) + BatchNorm2d(inference stats) + ReLU, NHWC.

    x: (N, H, W, Cin) when geom is None, else an already padded-flat
       (rows >= N*(H+2)*Wp, Cin) activation produced by a previous call with
       out_flat=True (geom = (N, H, W)).
    Returns (N, H, W, Cout) bf16 when out_flat=False, else the padded-flat
    (Rp, Cout) bf16 activation with invalid rows zeroed.
    """
    budgets = _budgets()
    if geom is None:
        n, h, wd, cin = x.shape
    else:
        n, h, wd = geom
        cin = x.shape[-1]
    hp, wp = h + 2, _pad_wp(wd)
    r_total = n * hp * wp
    cout = w.shape[-1]
    kf = 3 * cin

    # --- padded, flattened bf16 activation ----------------------------------
    if geom is None:
        xp = jnp.pad(x.astype(jnp.bfloat16),
                     ((0, 0), (1, 1), (1, wp - 1 - wd), (0, 0)))
        flat = xp.reshape(r_total, cin)
    else:
        flat = x[:r_total].astype(jnp.bfloat16)

    # --- BN scale baked into the bf16 weights / bias -------------------------
    s = 1.0 / (1.0 + BN_EPS) ** 0.5
    wf = (w.astype(jnp.float32) * s).reshape(3, kf, cout).astype(jnp.bfloat16)
    shift = (b.astype(jnp.float32) * s).reshape(1, cout)

    # --- tiles ----------------------------------------------------------------
    tk, tc = _pick_kc_tiles(kf, cout, budgets["weight"])
    tm = _pick_tm(r_total, wp, tk, budgets["lhs"])
    nb = -(-r_total // tm)
    rp = nb * tm
    win = tm + 2 * wp
    n_k = kf // tk

    # --- kx-folded, row-blocked halo windows: (nb, win, 3*Cin) ----------------
    # window[i, s, kx*Cin + c] = Xpflat[i*tm - Wp + s + (kx-1), c]
    p0 = wp + 1
    p1 = (rp - r_total) + wp + 1
    flat_p = jnp.pad(flat, ((p0, p1), (0, 0)))
    if nb <= 64:
        windows = jnp.stack(
            [jnp.concatenate([flat_p[i * tm + kx: i * tm + kx + win]
                              for kx in range(3)], axis=-1)
             for i in range(nb)], axis=0)
    else:
        rows = ((jnp.arange(nb, dtype=jnp.int32) * tm)[:, None, None]
                + jnp.arange(win, dtype=jnp.int32)[None, :, None]
                + jnp.arange(3, dtype=jnp.int32)[None, None, :])
        windows = jnp.take(flat_p, rows.reshape(-1), axis=0)
        windows = windows.reshape(nb, win, kf)

    # --- valid-row mask (zeroes border / width-pad / dead rows) ---------------
    rr = jnp.arange(rp, dtype=jnp.int32)
    ypos = (rr // wp) % hp
    xpos = rr % wp
    mask = ((rr < r_total) & (ypos >= 1) & (ypos <= h)
            & (xpos >= 1) & (xpos <= wd)).astype(jnp.float32).reshape(rp, 1)

    def kernel(lhs_ref, w_ref, sh_ref, m_ref, o_ref, *acc):
        a = jnp.dot(lhs_ref[0, 0:tm, :], w_ref[0],
                    preferred_element_type=jnp.float32)
        a = a + jnp.dot(lhs_ref[0, wp:wp + tm, :], w_ref[1],
                        preferred_element_type=jnp.float32)
        a = a + jnp.dot(lhs_ref[0, 2 * wp:2 * wp + tm, :], w_ref[2],
                        preferred_element_type=jnp.float32)

        def epilogue(acc_val):
            y = acc_val + sh_ref[...]
            if relu:
                y = jnp.maximum(y, 0.0)
            o_ref[...] = (y * m_ref[...]).astype(o_ref.dtype)

        if n_k == 1:
            epilogue(a)
        else:
            acc_ref = acc[0]
            k = pl.program_id(2)

            @pl.when(k == 0)
            def _():
                acc_ref[...] = a

            @pl.when(k > 0)
            def _():
                acc_ref[...] += a

            @pl.when(k == n_k - 1)
            def _():
                epilogue(acc_ref[...])

    y = pl.pallas_call(
        kernel,
        out_shape=jax.ShapeDtypeStruct((rp, cout), jnp.bfloat16),
        grid=(nb, cout // tc, n_k),
        in_specs=[
            pl.BlockSpec((1, win, tk), lambda i, j, k: (i, 0, k)),
            pl.BlockSpec((3, tk, tc), lambda i, j, k: (0, k, j)),
            pl.BlockSpec((1, tc), lambda i, j, k: (0, j)),
            pl.BlockSpec((tm, 1), lambda i, j, k: (i, 0)),
        ],
        out_specs=pl.BlockSpec((tm, tc), lambda i, j, k: (i, j)),
        scratch_shapes=([pltpu.VMEM((tm, tc), jnp.float32)] if n_k > 1 else []),
        compiler_params=pltpu.CompilerParams(
            dimension_semantics=("parallel", "parallel", "arbitrary"),
            vmem_limit_bytes=budgets["vmem"]),
    )(windows, wf, shift, mask)

    if out_flat:
        return y
    return y[:r_total].reshape(n, hp, wp, cout)[:, 1:h + 1, 1:wd + 1, :]


# ---------------------------------------------------------------------------
# Lane-dense, row-tiled 1x1 outconv (classes padded to 128 lanes)
# ---------------------------------------------------------------------------
def outconv_1x1(x, w, b):
    n, h, wd, cin = x.shape
    n_classes = w.shape[-1]
    m = n * h * wd
    tmm = min(1024, _round_up(m, 8))
    mp = -(-m // tmm) * tmm
    cp = _round_up(max(n_classes, 1), 128)

    a = jnp.pad(x.reshape(m, cin).astype(jnp.bfloat16), ((0, mp - m), (0, 0)))
    w_pad = jnp.zeros((cin, cp), jnp.bfloat16).at[:, :n_classes].set(
        w.reshape(cin, n_classes).astype(jnp.bfloat16))
    b_pad = jnp.zeros((1, cp), jnp.float32).at[:, :n_classes].set(
        b.reshape(1, n_classes).astype(jnp.float32))

    def kernel(a_ref, w_ref, b_ref, o_ref):
        o_ref[...] = jnp.dot(a_ref[...], w_ref[...],
                             preferred_element_type=jnp.float32) + b_ref[...]

    y = pl.pallas_call(
        kernel,
        out_shape=jax.ShapeDtypeStruct((mp, cp), jnp.float32),
        grid=(mp // tmm,),
        in_specs=[pl.BlockSpec((tmm, cin), lambda i: (i, 0)),
                  pl.BlockSpec((cin, cp), lambda i: (0, 0)),
                  pl.BlockSpec((1, cp), lambda i: (0, 0))],
        out_specs=pl.BlockSpec((tmm, cp), lambda i: (i, 0)),
        compiler_params=pltpu.CompilerParams(
            dimension_semantics=("parallel",),
            vmem_limit_bytes=_budgets()["vmem"]),
    )(a, w_pad, b_pad)
    return y[:m, :n_classes].reshape(n, h, wd, n_classes)


# ---------------------------------------------------------------------------
# Pool / upsample / U-Net blocks
# ---------------------------------------------------------------------------
def maxpool2(x):
    # Left to XLA: fused reshape+max avoids extra kernel launches per block.
    n, h, wd, c = x.shape
    return x.reshape(n, h // 2, 2, wd // 2, 2, c).max(axis=(2, 4))


def upsample_bilinear_x2(x):
    """nn.Upsample(scale_factor=2, mode='bilinear', align_corners=True), NHWC.
    # TODO(synk): PyTorch nn.Upsample defaults to align_corners=False; adjust if
    # the reference module uses the default."""
    n, h, wd, c = x.shape

    def interp_matrix(n_in):
        n_out = 2 * n_in
        if n_in == 1:
            return jnp.ones((n_out, 1), jnp.float32)
        src = jnp.arange(n_out, dtype=jnp.float32) * (n_in - 1) / (n_out - 1)
        lo = jnp.clip(jnp.floor(src).astype(jnp.int32), 0, n_in - 2)
        frac = src - lo.astype(jnp.float32)
        a = jnp.zeros((n_out, n_in), jnp.float32)
        a = a.at[jnp.arange(n_out), lo].set(1.0 - frac)
        a = a.at[jnp.arange(n_out), lo + 1].add(frac)
        return a

    y = jnp.einsum('ih,jw,nhwc->nijc', interp_matrix(h), interp_matrix(wd),
                   x.astype(jnp.float32))
    return y.astype(jnp.bfloat16)


def double_conv(p, x):
    n, h, wd = x.shape[0], x.shape[1], x.shape[2]
    # First conv emits the padded-flat layout the second conv consumes directly.
    y = conv3x3_bn_relu(x, p['c1']['w'], p['c1']['b'], out_flat=True)
    return conv3x3_bn_relu(y, p['c2']['w'], p['c2']['b'], geom=(n, h, wd))


def down_block(p, x):
    return double_conv(p, maxpool2(x))


def up_block(p, x1, x2):
    x1 = upsample_bilinear_x2(x1)
    dh = x2.shape[1] - x1.shape[1]
    dw = x2.shape[2] - x1.shape[2]
    x1 = jnp.pad(x1, ((0, 0), (dh // 2, dh - dh // 2),
                      (dw // 2, dw - dw // 2), (0, 0)))
    x = jnp.concatenate([x2.astype(jnp.bfloat16), x1], axis=-1)  # cat([x2,x1])
    return double_conv(p, x)


# ---------------------------------------------------------------------------
# Parameter init (deterministic, synthetic; weights stored bf16 for the MXU)
# ---------------------------------------------------------------------------
def _conv_params(key, kh, kw, cin, cout):
    kw_, kb_ = jax.random.split(key)
    fan_in = kh * kw * cin
    w = (jax.random.normal(kw_, (kh, kw, cin, cout), jnp.float32)
         * (2.0 / fan_in) ** 0.5).astype(jnp.bfloat16)
    b = jax.random.normal(kb_, (cout,), jnp.float32) * 0.01
    return {'w': w, 'b': b}


def _double_conv_params(key, cin, cout):
    k1, k2 = jax.random.split(key)
    return {'c1': _conv_params(k1, 3, 3, cin, cout),
            'c2': _conv_params(k2, 3, 3, cout, cout)}


def init_params(key, n_channels, n_classes):
    keys = jax.random.split(key, 12)
    return {
        'inc':   _double_conv_params(keys[0], n_channels, 64),
        'down1': _double_conv_params(keys[1], 64, 128),
        'down2': _double_conv_params(keys[2], 128, 256),
        'down3': _double_conv_params(keys[3], 256, 512),
        'down4': _double_conv_params(keys[4], 512, 1024),
        'down5': _double_conv_params(keys[5], 1024, 1024),
        'up1':   _double_conv_params(keys[6], 2048 * 2, 512),
        'up2':   _double_conv_params(keys[7], 1024 + 512, 256),
        'up3':   _double_conv_params(keys[8], 512 + 256, 128),
        'up4':   _double_conv_params(keys[9], 256 + 128, 64),
        'up5':   _double_conv_params(keys[10], 128 + 64, 64),
        'outc':  _conv_params(keys[11], 1, 1, 64, n_classes),
    }


# ---------------------------------------------------------------------------
# Full forward pass (NCHW in / NCHW out, like the PyTorch module)
# ---------------------------------------------------------------------------
def forward(params, x_d1_nchw, x_d2_nchw):
    x_d1 = jnp.transpose(x_d1_nchw, (0, 2, 3, 1))   # NCHW -> NHWC
    x_d2 = jnp.transpose(x_d2_nchw, (0, 2, 3, 1))
    n = x_d1.shape[0]

    # Shared-weight temporal encoders: run once on a batched input.
    xb = jnp.concatenate([x_d1, x_d2], axis=0)
    x1 = double_conv(params['inc'], xb)
    x2 = down_block(params['down1'], x1)
    x3 = down_block(params['down2'], x2)
    x4 = down_block(params['down3'], x3)
    x5 = down_block(params['down4'], x4)
    x6 = down_block(params['down5'], x5)

    def cat_dates(t):   # torch.cat([x_d2, x_d1], dim=1) -> channel concat NHWC
        return jnp.concatenate([t[n:], t[:n]], axis=-1)

    x = up_block(params['up1'], cat_dates(x6), cat_dates(x5))
    x = up_block(params['up2'], x, cat_dates(x4))
    x = up_block(params['up3'], x, cat_dates(x3))
    x = up_block(params['up4'], x, cat_dates(x2))
    x = up_block(params['up5'], x, cat_dates(x1))
    x = outconv_1x1(x, params['outc']['w'], params['outc']['b'])
    return jnp.transpose(x, (0, 3, 1, 2))            # NHWC -> NCHW


# ---------------------------------------------------------------------------
if __name__ == "__main__":
    key = jax.random.PRNGKey(0)
    kp, k1, k2 = jax.random.split(key, 3)

    # ---- lightweight numerical self-check of the conv kernel ----------------
    kc, kx_ = jax.random.split(jax.random.PRNGKey(1), 2)
    xt = jax.random.normal(kx_, (1, 8, 8, 16), jnp.float32)
    pt = _double_conv_params(kc, 16, 32)
    got = double_conv(pt, xt)
    s = 1.0 / (1.0 + BN_EPS) ** 0.5

    def ref_conv(t, w, b):
        wq = (w.astype(jnp.float32) * s).astype(jnp.bfloat16)
        y = jax.lax.conv_general_dilated(
            t.astype(jnp.bfloat16), wq, (1, 1), 'SAME',
            dimension_numbers=('NHWC', 'HWIO', 'NHWC'),
            preferred_element_type=jnp.float32)
        return jnp.maximum(y + (b.astype(jnp.float32) * s), 0.0).astype(jnp.bfloat16)

    want = ref_conv(ref_conv(xt, pt['c1']['w'], pt['c1']['b']),
                    pt['c2']['w'], pt['c2']['b'])
    err = float(jnp.max(jnp.abs(got.astype(jnp.float32) - want.astype(jnp.float32))))
    assert err < 0.1, f"conv self-check max|diff|={err}"

    # ---- full model ----------------------------------------------------------
    n_channels, n_classes = 3, 2
    N, H, W = 2, 32, 32   # spatial >= 32 so five 2x2 max-pools are valid

    params = init_params(kp, n_channels, n_classes)
    x_d1 = jax.random.normal(k1, (N, n_channels, H, W), jnp.float32)
    x_d2 = jax.random.normal(k2, (N, n_channels, H, W), jnp.float32)

    out = jax.jit(forward)(params, x_d1, x_d2)
    out = jax.block_until_ready(out)

    assert out.shape == (N, n_classes, H, W), out.shape
    assert bool(jnp.all(jnp.isfinite(out)))
    print("KERNEL_OK")
</pallas_src>

<mosaic_0001>
module attributes {stable_mosaic.version = 11 : i64} {
  func.func @kernel(%arg0: i32, %arg1: i32, %arg2: i32, %arg3: memref<1x192x48xbf16, #tpu.memory_space<vmem>>, %arg4: memref<3x48x32xbf16, #tpu.memory_space<vmem>>, %arg5: memref<1x32xf32, #tpu.memory_space<vmem>>, %arg6: memref<160x1xf32, #tpu.memory_space<vmem>>, %arg7: memref<160x32xbf16, #tpu.memory_space<vmem>>) attributes {dimension_semantics = [#tpu.dimension_semantics<parallel>, #tpu.dimension_semantics<parallel>, #tpu.dimension_semantics<arbitrary>], iteration_bounds = array<i64: 1, 1, 1>, scalar_prefetch = 0 : i64, scratch_operands = 0 : i64, tpu.core_type = #tpu.core_type<tc>, window_params = [{transform_indices = @transform_0, window_bounds = array<i64: 1, 192, 48>}, {transform_indices = @transform_1, window_bounds = array<i64: 3, 48, 32>}, {transform_indices = @transform_2, window_bounds = array<i64: 1, 32>}, {transform_indices = @transform_3, window_bounds = array<i64: 160, 1>}, {transform_indices = @transform_4, window_bounds = array<i64: 160, 32>}]} {
    %c0 = arith.constant 0 : index
    %c0_0 = arith.constant 0 : index
    %c0_1 = arith.constant 0 : index
    %0 = vector.load %arg3[%c0, %c0_0, %c0_1] : memref<1x192x48xbf16, #tpu.memory_space<vmem>>, vector<1x160x48xbf16>
    %1 = vector.shape_cast %0 : vector<1x160x48xbf16> to vector<160x48xbf16>
    %c0_2 = arith.constant 0 : index
    %c0_3 = arith.constant 0 : index
    %c0_4 = arith.constant 0 : index
    %2 = vector.load %arg4[%c0_2, %c0_3, %c0_4] : memref<3x48x32xbf16, #tpu.memory_space<vmem>>, vector<1x48x32xbf16>
    %3 = vector.shape_cast %2 : vector<1x48x32xbf16> to vector<48x32xbf16>
    %cst = arith.constant dense<0.000000e+00> : vector<160x32xf32>
    %4 = tpu.matmul %1, %3, %cst {dimension_numbers = #tpu.dot_dimension_numbers<[1], [0], [0], [1], [0, 0, 1, 1], [], []>} : vector<160x48xbf16>, vector<48x32xbf16>, vector<160x32xf32> -> vector<160x32xf32>
    %c0_5 = arith.constant 0 : index
    %c16 = arith.constant 16 : index
    %c0_6 = arith.constant 0 : index
    %5 = vector.load %arg3[%c0_5, %c16, %c0_6] : memref<1x192x48xbf16, #tpu.memory_space<vmem>>, vector<1x160x48xbf16>
    %6 = vector.shape_cast %5 : vector<1x160x48xbf16> to vector<160x48xbf16>
    %c1 = arith.constant 1 : index
    %c0_7 = arith.constant 0 : index
    %c0_8 = arith.constant 0 : index
    %7 = vector.load %arg4[%c1, %c0_7, %c0_8] : memref<3x48x32xbf16, #tpu.memory_space<vmem>>, vector<1x48x32xbf16>
    %8 = vector.shape_cast %7 : vector<1x48x32xbf16> to vector<48x32xbf16>
    %cst_9 = arith.constant dense<0.000000e+00> : vector<160x32xf32>
    %9 = tpu.matmul %6, %8, %cst_9 {dimension_numbers = #tpu.dot_dimension_numbers<[1], [0], [0], [1], [0, 0, 1, 1], [], []>} : vector<160x48xbf16>, vector<48x32xbf16>, vector<160x32xf32> -> vector<160x32xf32>
    %10 = arith.addf %4, %9 : vector<160x32xf32>
    %c0_10 = arith.constant 0 : index
    %c32 = arith.constant 32 : index
    %c0_11 = arith.constant 0 : index
    %11 = vector.load %arg3[%c0_10, %c32, %c0_11] : memref<1x192x48xbf16, #tpu.memory_space<vmem>>, vector<1x160x48xbf16>
    %12 = vector.shape_cast %11 : vector<1x160x48xbf16> to vector<160x48xbf16>
    %c2 = arith.constant 2 : index
    %c0_12 = arith.constant 0 : index
    %c0_13 = arith.constant 0 : index
    %13 = vector.load %arg4[%c2, %c0_12, %c0_13] : memref<3x48x32xbf16, #tpu.memory_space<vmem>>, vector<1x48x32xbf16>
    %14 = vector.shape_cast %13 : vector<1x48x32xbf16> to vector<48x32xbf16>
    %cst_14 = arith.constant dense<0.000000e+00> : vector<160x32xf32>
    %15 = tpu.matmul %12, %14, %cst_14 {dimension_numbers = #tpu.dot_dimension_numbers<[1], [0], [0], [1], [0, 0, 1, 1], [], []>} : vector<160x48xbf16>, vector<48x32xbf16>, vector<160x32xf32> -> vector<160x32xf32>
    %16 = arith.addf %10, %15 : vector<160x32xf32>
    %c0_15 = arith.constant 0 : index
    %c0_16 = arith.constant 0 : index
    %17 = vector.load %arg5[%c0_15, %c0_16] : memref<1x32xf32, #tpu.memory_space<vmem>>, vector<1x32xf32>
    %18 = vector.broadcast %17 : vector<1x32xf32> to vector<160x32xf32>
    %19 = arith.addf %16, %18 : vector<160x32xf32>
    %cst_17 = arith.constant 0.000000e+00 : f32
    %20 = vector.broadcast %cst_17 : f32 to vector<160x32xf32>
    %21 = arith.maximumf %19, %20 : vector<160x32xf32>
    %c0_18 = arith.constant 0 : index
    %c0_19 = arith.constant 0 : index
    %22 = vector.load %arg6[%c0_18, %c0_19] : memref<160x1xf32, #tpu.memory_space<vmem>>, vector<160x1xf32>
    %23 = vector.broadcast %22 : vector<160x1xf32> to vector<160x32xf32>
    %24 = arith.mulf %21, %23 : vector<160x32xf32>
    %25 = arith.truncf %24 : vector<160x32xf32> to vector<160x32xbf16>
    %c0_20 = arith.constant 0 : index
    %c0_21 = arith.constant 0 : index
    %26 = vector.load %arg7[%c0_20, %c0_21] : memref<160x32xbf16, #tpu.memory_space<vmem>>, vector<160x32xbf16>
    tpu.vector_store %arg7[%c0_20, %c0_21], %25 {strides = array<i32>} : memref<160x32xbf16, #tpu.memory_space<vmem>>, vector<160x32xbf16>,
    return
  }
  func.func @transform_0(%arg0: i32, %arg1: i32, %arg2: i32) -> (i32, i32, i32) {
    %c0_i32 = arith.constant 0 : i32
    %c0_i32_0 = arith.constant 0 : i32
    return %arg0, %c0_i32, %arg2 : i32, i32, i32
  }
  func.func @transform_1(%arg0: i32, %arg1: i32, %arg2: i32) -> (i32, i32, i32) {
    %c0_i32 = arith.constant 0 : i32
    %c0_i32_0 = arith.constant 0 : i32
    return %c0_i32, %arg2, %arg1 : i32, i32, i32
  }
  func.func @transform_2(%arg0: i32, %arg1: i32, %arg2: i32) -> (i32, i32) {
    %c0_i32 = arith.constant 0 : i32
    %c0_i32_0 = arith.constant 0 : i32
    return %c0_i32, %arg1 : i32, i32
  }
  func.func @transform_3(%arg0: i32, %arg1: i32, %arg2: i32) -> (i32, i32) {
    %c0_i32 = arith.constant 0 : i32
    %c0_i32_0 = arith.constant 0 : i32
    return %arg0, %c0_i32 : i32, i32
  }
  func.func @transform_4(%arg0: i32, %arg1: i32, %arg2: i32) -> (i32, i32) {
    %c0_i32 = arith.constant 0 : i32
    return %arg0, %arg1 : i32, i32
  }
}

</mosaic_0001>

<bundles_post_ra>
// kernel: tpu_custom_call.1
= control target key start
LH: loop header
LB: loop body
LE: loop exit
PB: predicated region body
PF: predicated region fallthrough
CT: control target
= control target key end

     0   :  { %v935_v3 = vmov 0   ;;  %vm121_vm0 = vcmask 392192   ;;  %vm704_vm1 = vcmask 257024   ;;  %s1282_s1 = inlined_call_operand.vmem [shape: bf16[3,48,32], index: 1, kind: input, shape index: {}]   ;;  %s1283_s3 = inlined_call_operand.vmem [shape: f32[160,1], index: 3, kind: input, shape index: {}]   ;;  %s1284_s0 = inlined_call_operand.vmem [shape: bf16[1,192,48], index: 0, kind: input, shape index: {}]   ;;  %s1285_s2 = inlined_call_operand.vmem [shape: f32[1,32], index: 2, kind: input, shape index: {}]   ;;  %s1286_s4 = inlined_call_operand.vmem [shape: bf16[160,32], index: 4, kind: output, shape index: {}]  }
   0x1   :  { %v907_v0 = vld [vmem:[%s1282_s1 + $0x28] sm:$0xff]  ;;  %v903_v1 = vld [vmem:[%s1282_s1 + $0x10] sm:$0xff]  ;;  %v920_v2 = vld [vmem:[%s1282_s1 + $0x40] sm:$0xff]  ;;  %931 = vset.pattern.permute.xlu0 %v935_v3  ;;  %932 = vset.pattern.permute.xlu1 %v935_v3 }
   0x2   :  { %933 = vset.pattern.permute.xlu2 %v935_v3  ;;  %157 = vmatpush.bf16.msra.mxu0 %v907_v0  ;;  %v906_v4 = vld [vmem:[%s1282_s1 + $0x20] sm:$0xff]  ;;  %v902_v5 = vld [vmem:[%s1282_s1 + $0x8] sm:$0xff]  ;;  %v919_v6 = vld [vmem:[%s1282_s1 + $0x38] sm:$0xff] }
   0x3   :  { %921 = vmatpush.bf16.msra.mxu3 %v907_v0  ;;  %242 = vmatpush.bf16.msra.mxu1 %v903_v1  ;;  %v544_v7 = vld [vmem:[%s1283_s3] sm:$0xff]  ;;  %v905_v8 = vld [vmem:[%s1282_s1 + $0x18] sm:$0xff]  ;;  %v918_v10 = vld [vmem:[%s1282_s1 + $0x30] sm:$0xff] }
   0x4   :  { %426 = vmatpush.bf16.msra.mxu2 %v920_v2  ;;  %v901_v9 = vld [vmem:[%s1282_s1] sm:$0xff]  ;;  %566 = vperm.xlu0 %931, %v544_v7   ;;  %v892_v11 = vld [vmem:[%s1284_s0 + $0x8] sm:$0xff]  ;;  %v908_v14 = vld [vmem:[%s1284_s0 + $0x10] sm:$0xff] }
   0x5   :  { %v900_v12 = vld [vmem:[%s1284_s0 + $0x48] sm:$0xff]  ;;  %v891_v13 = vld [vmem:[%s1284_s0] sm:$0xff]  ;;  %v546_v16 = vld [vmem:[%s1283_s3 + $0x10] sm:$0xff] }
   0x6   :  { %158 = vmatpush.bf16.msra.mxu0 %v906_v4  ;;  %v545_v15 = vld [vmem:[%s1283_s3 + $0x8] sm:$0xff]  ;;  %576 = vperm.xlu1 %932, %v546_v16   ;;  %v547_v17 = vld [vmem:[%s1283_s3 + $0x18] sm:$0xff]  ;;  %v893_v18 = vld [vmem:[%s1284_s0 + $0x10] sm:$0xff] }
   0x7   :  { %922 = vmatpush.bf16.msra.mxu3 %v906_v4  ;;  %243 = vmatpush.bf16.msra.mxu1 %v902_v5  ;;  %v904_v19 = vld [vmem:[%s1284_s0 + $0x50] sm:$0xff]  ;;  %v909_v20 = vld [vmem:[%s1284_s0 + $0x18] sm:$0xff]  ;;  %v899_v24 = vld [vmem:[%s1284_s0 + $0x40] sm:$0xff] }
   0x8   :  { %427 = vmatpush.bf16.msra.mxu2 %v919_v6  ;;  %v551_v21 = vld [vmem:[%s1283_s3 + $0x38] sm:$0xff]  ;;  %v550_v22 = vld [vmem:[%s1283_s3 + $0x30] sm:$0xff]  ;;  %v910_v25 = vld [vmem:[%s1284_s0 + $0x20] sm:$0xff] }
   0x9   :  { %v894_v23 = vld [vmem:[%s1284_s0 + $0x18] sm:$0xff]  ;;  %v554_v26 = vld [vmem:[%s1283_s3 + $0x50] sm:$0xff]  ;;  %v553_v27 = vld [vmem:[%s1283_s3 + $0x48] sm:$0xff] }
   0xa   :  { %159 = vmatpush.bf16.msra.mxu0 %v905_v8  ;;  %v548_v28 = vld [vmem:[%s1283_s3 + $0x20] sm:$0xff]  ;;  %v557_v29 = vld [vmem:[%s1283_s3 + $0x68] sm:$0xff]  ;;  %v559_v35 = vld [vmem:[%s1283_s3 + $0x78] sm:$0xff] }
   0xb   :  { %923 = vmatpush.bf16.msra.mxu3 %v905_v8  ;;  %244 = vmatpush.bf16.msra.mxu1 %v901_v9  ;;  %v556_v30 = vld [vmem:[%s1283_s3 + $0x60] sm:$0xff]  ;;  %v911_v32 = vld [vmem:[%s1284_s0 + $0x28] sm:$0xff]  ;;  %v563_v37 = vld [vmem:[%s1283_s3 + $0x98] sm:$0xff] }
   0xc   :  { %428 = vmatpush.bf16.msra.mxu2 %v918_v10  ;;  %571 = vperm.xlu0 %931, %v545_v15   ;;  %v895_v31 = vld [vmem:[%s1284_s0 + $0x20] sm:$0xff]  ;;  %v549_v33 = vld [vmem:[%s1283_s3 + $0x28] sm:$0xff]  ;;  %v562_v38 = vld [vmem:[%s1283_s3 + $0x90] sm:$0xff] }
   0xd   :  { %787 = vmatmul.msk.bf16.vlgmr.msra.gmra.mxu0 %vm121_vm0, %v892_v11  ;;  %586 = vperm.xlu2 %933, %v548_v28   ;;  %v560_v34 = vld [vmem:[%s1283_s3 + $0x80] sm:$0xff]  ;;  %v896_v39 = vld [vmem:[%s1284_s0 + $0x28] sm:$0xff]  ;;  %v916_v40 = vld [vmem:[%s1284_s0 + $0x50] sm:$0xff] }
   0xe   :  { %795 = vmatmul.msk.bf16.vlgmr.msra.gmra.mxu3 %vm121_vm0, %v900_v12  ;;  %813 = vmatmul.msk.bf16.vlgmr.msra.gmra.mxu1 %vm121_vm0, %v891_v13  ;;  %v552_v36 = vld [vmem:[%s1283_s3 + $0x40] sm:$0xff]  ;;  %v912_v41 = vld [vmem:[%s1284_s0 + $0x30] sm:$0xff]  ;;  %v555_v42 = vld [vmem:[%s1283_s3 + $0x58] sm:$0xff] }
   0xf   :  { %924 = vmatpush.bf16.msrb.mxu3 %v903_v1  ;;  %881 = vmatmul.msk.bf16.vlgmr.msra.gmra.mxu2 %vm121_vm0, %v908_v14  ;;  %v558_v43 = vld [vmem:[%s1283_s3 + $0x70] sm:$0xff]  ;;  %v917_v45 = vld [vmem:[%s1284_s0 + $0x58] sm:$0xff]  ;;  %v561_v47 = vld [vmem:[%s1283_s3 + $0x88] sm:$0xff] }
  0x10   :  { %581 = vperm.xlu1 %932, %v547_v17   ;;  %v897_v44 = vld [vmem:[%s1284_s0 + $0x30] sm:$0xff]  ;;  %v913_v46 = vld [vmem:[%s1284_s0 + $0x38] sm:$0xff]  ;;  %v914_v49 = vld [vmem:[%s1284_s0 + $0x40] sm:$0xff] }
  0x11   :  { %v898_v48 = vld [vmem:[%s1284_s0 + $0x38] sm:$0xff]  ;;  %v915_v50 = vld [vmem:[%s1284_s0 + $0x48] sm:$0xff]  ;;  %v1146_v55 = vld [vmem:[%s1285_s2] ss:$0 sm:$0xff] }
  0x13   :  { %925 = vmatpush.bf16.msrb.mxu3 %v902_v5 }
  0x14   :  { %596 = vperm.xlu0 %931, %v550_v22  }
  0x15   :  { %591 = vperm.xlu2 %933, %v549_v33  }
  0x17   :  { %926 = vmatpush.bf16.msrb.mxu3 %v901_v9 }
  0x18   :  { %601 = vperm.xlu1 %932, %v551_v21  }
  0x1b   :  { %927 = vmatpush.bf16.msra.mxu3 %v920_v2 }
  0x1c   :  { %611 = vperm.xlu0 %931, %v553_v27  }
  0x1d   :  { %788 = vmatmul.msk.bf16.gmra.mxu0 %vm121_vm0, %v893_v18  ;;  %606 = vperm.xlu2 %933, %v552_v36  }
  0x1e   :  { %796 = vmatmul.msk.bf16.gmra.mxu3 %vm121_vm0, %v904_v19  ;;  %814 = vmatmul.msk.bf16.gmra.mxu1 %vm121_vm0, %v892_v11 }
  0x1f   :  { %928 = vmatpush.bf16.msra.mxu3 %v919_v6  ;;  %882 = vmatmul.msk.bf16.gmra.mxu2 %vm121_vm0, %v909_v20 }
  0x20   :  { %616 = vperm.xlu1 %932, %v554_v26  }
  0x23   :  { %929 = vmatpush.bf16.msra.mxu3 %v918_v10 }
  0x24   :  { %626 = vperm.xlu0 %931, %v556_v30  }
  0x25   :  { %621 = vperm.xlu2 %933, %v555_v42  }
  0x28   :  { %631 = vperm.xlu1 %932, %v557_v29  }
  0x2c   :  { %641 = vperm.xlu0 %931, %v559_v35  }
  0x2d   :  { %789 = vmatmul.msk.bf16.gmra.mxu0 %vm121_vm0, %v894_v23  ;;  %636 = vperm.xlu2 %933, %v558_v43  }
  0x2e   :  { %821 = vmatmul.msk.bf16.vlgmr.msrb.gmra.mxu3 %vm121_vm0, %v899_v24  ;;  %815 = vmatmul.msk.bf16.gmra.mxu1 %vm121_vm0, %v893_v18 }
  0x2f   :  { %883 = vmatmul.msk.bf16.gmra.mxu2 %vm121_vm0, %v910_v25 }
  0x30   :  { %646 = vperm.xlu1 %932, %v560_v34  }
  0x34   :  { %656 = vperm.xlu0 %931, %v562_v38  }
  0x35   :  { %651 = vperm.xlu2 %933, %v561_v47  }
  0x38   :  { %661 = vperm.xlu1 %932, %v563_v37  }
  0x3d   :  { %790 = vmatmul.msk.bf16.gmra.mxu0 %vm121_vm0, %v895_v31 }
  0x3e   :  { %822 = vmatmul.msk.bf16.gmra.mxu3 %vm121_vm0, %v900_v12  ;;  %816 = vmatmul.msk.bf16.gmra.mxu1 %vm121_vm0, %v894_v23 }
  0x3f   :  { %884 = vmatmul.msk.bf16.gmra.mxu2 %vm121_vm0, %v911_v32 }
  0x4d   :  { %791 = vmatmul.msk.bf16.gmra.mxu0 %vm121_vm0, %v896_v39 }
  0x4e   :  { %889 = vmatmul.msk.bf16.vlgmr.msra.gmra.mxu3 %vm121_vm0, %v916_v40  ;;  %817 = vmatmul.msk.bf16.gmra.mxu1 %vm121_vm0, %v895_v31 }
  0x4f   :  { %885 = vmatmul.msk.bf16.gmra.mxu2 %vm121_vm0, %v912_v41 }
  0x5d   :  { %792 = vmatmul.msk.bf16.gmra.mxu0 %vm121_vm0, %v897_v44 }
  0x5e   :  { %890 = vmatmul.msk.bf16.gmra.mxu3 %vm121_vm0, %v917_v45  ;;  %818 = vmatmul.msk.bf16.gmra.mxu1 %vm121_vm0, %v896_v39 }
  0x5f   :  { %886 = vmatmul.msk.bf16.gmra.mxu2 %vm121_vm0, %v913_v46 }
  0x67   :  { %v587_v28 = vpop.permute.xlu2 %586 }
  0x6d   :  { %793 = vmatmul.msk.bf16.gmra.mxu0 %vm121_vm0, %v898_v48 }
  0x6e   :  { %819 = vmatmul.msk.bf16.gmra.mxu1 %vm121_vm0, %v897_v44 }
  0x6f   :  { %887 = vmatmul.msk.bf16.gmra.mxu2 %vm121_vm0, %v914_v49  ;;  %v592_v42 = vpop.permute.xlu2 %591 }
  0x76   :  { %v567_v60 = vpop.permute.xlu0 %566 }
  0x78   :  { %v577_v18 = vpop.permute.xlu1 %576 }
  0x7d   :  { %794 = vmatmul.msk.bf16.gmra.mxu0 %vm121_vm0, %v899_v24 }
  0x7e   :  { %820 = vmatmul.msk.bf16.gmra.mxu1 %vm121_vm0, %v898_v48  ;;  %v572_v8 = vpop.permute.xlu0 %571 }
  0x7f   :  { %888 = vmatmul.msk.bf16.gmra.mxu2 %vm121_vm0, %v915_v50 }
  0x82   :  { %v582_v31 = vpop.permute.xlu1 %581 }
  0x8a   :  { %v161_v51 = vpop.f32.mrf.mxu0  ;;  %v602_v44 = vpop.permute.xlu1 %601 }
  0x8b   :  { %v246_v52 = vpop.f32.mrf.mxu1 }
  0x8c   :  { %v247_v53 = vadd.f32 %v246_v52, %v161_v51 }
  0x91   :  { %v1141_v54 = vpop.f32.mrf.mxu3 }
  0x92   :  { %v430_v56 = vpop.f32.mrf.mxu2  ;;  %v163_v58 = vpop.f32.mrf.mxu0 }
  0x93   :  { %v480_v57 = vadd.f32 %v430_v56, %v247_v53  ;;  %v248_v59 = vpop.f32.mrf.mxu1  ;;  %v597_v56 = vpop.permute.xlu0 %596 }
  0x94   :  { %v249_v63 = vadd.f32 %v248_v59, %v163_v58  ;;  %v607_v59 = vpop.permute.xlu2 %606 }
  0x95   :  { %v504_v61 = vadd.f32 %v1146_v55, %v480_v57 }
  0x97   :  { %v524_v62 = vmax.f32 %v504_v61, 0.0 }
  0x99   :  { %v664_v0 = vmul.f32 %v567_v60, %v524_v62  ;;  %v1149_v1 = vpop.f32.mrf.mxu3  ;;  %v1182_v62 = vpop.permute.xlu1 %616 }
  0x9a   :  { %v432_v2 = vpop.f32.mrf.mxu2  ;;  %v166_v5 = vpop.f32.mrf.mxu0 }
  0x9b   :  { %v684_v3 = vpack.c.bf16 %v664_v0, %v664_v0  ;;  %v481_v4 = vadd.f32 %v432_v2, %v249_v63  ;;  %v251_v6 = vpop.f32.mrf.mxu1 }
  0x9c   :  { %v252_v9 = vadd.f32 %v251_v6, %v166_v5 }
  0x9d   :  { %705 = vst.msk [vmem:[%s1286_s4] sm:$0xf] %vm704_vm1, %v684_v3  ;;  %v505_v7 = vadd.f32 %v1146_v55, %v481_v4 }
  0x9f   :  { %v525_v10 = vmax.f32 %v505_v7, 0.0  ;;  %v612_v7 = vpop.permute.xlu0 %611 }
  0xa1   :  { %v665_v11 = vmul.f32 %v572_v8, %v525_v10  ;;  %v1156_v12 = vpop.f32.mrf.mxu3 }
  0xa2   :  { %v435_v13 = vpop.f32.mrf.mxu2  ;;  %v168_v16 = vpop.f32.mrf.mxu0 }
  0xa3   :  { %v685_v14 = vpack.c.bf16 %v665_v11, %v665_v11  ;;  %v482_v15 = vadd.f32 %v435_v13, %v252_v9  ;;  %v253_v17 = vpop.f32.mrf.mxu1  ;;  %v1191_v11 = vpop.permute.xlu2 %621 }
  0xa4   :  { %v254_v21 = vadd.f32 %v253_v17, %v168_v16  ;;  %v1193_v17 = vpop.permute.xlu1 %631 }
  0xa5   :  { %706 = vst.msk [vmem:[%s1286_s4 + $0x4] sm:$0xf] %vm704_vm1, %v685_v14  ;;  %v506_v19 = vadd.f32 %v1146_v55, %v482_v15 }
  0xa7   :  { %v526_v20 = vmax.f32 %v506_v19, 0.0 }
  0xa9   :  { %v666_v22 = vmul.f32 %v577_v18, %v526_v20  ;;  %v1163_v23 = vpop.f32.mrf.mxu3 }
  0xaa   :  { %v437_v24 = vpop.f32.mrf.mxu2  ;;  %v171_v27 = vpop.f32.mrf.mxu0 }
  0xab   :  { %v686_v25 = vpack.c.bf16 %v666_v22, %v666_v22  ;;  %v483_v26 = vadd.f32 %v437_v24, %v254_v21  ;;  %v256_v29 = vpop.f32.mrf.mxu1 }
  0xac   :  { %v257_v32 = vadd.f32 %v256_v29, %v171_v27 }
  0xad   :  { %707 = vst.msk [vmem:[%s1286_s4 + $0x8] sm:$0xf] %vm704_vm1, %v686_v25  ;;  %v507_v30 = vadd.f32 %v1146_v55, %v483_v26  ;;  %v1201_v26 = vpop.permute.xlu0 %626 }
  0xaf   :  { %v527_v33 = vmax.f32 %v507_v30, 0.0 }
  0xb1   :  { %v667_v34 = vmul.f32 %v582_v31, %v527_v33  ;;  %v286_v35 = vpop.f32.mrf.mxu3 }
  0xb2   :  { %v440_v36 = vpop.f32.mrf.mxu2  ;;  %v173_v39 = vpop.f32.mrf.mxu0  ;;  %v287_v22 = vadd.f32 %v286_v35, %v1141_v54 }
  0xb3   :  { %v687_v37 = vpack.c.bf16 %v667_v34, %v667_v34  ;;  %v484_v38 = vadd.f32 %v440_v36, %v257_v32  ;;  %v258_v40 = vpop.f32.mrf.mxu1  ;;  %v1203_v32 = vpop.permute.xlu2 %636 }
  0xb4   :  { %v259_v45 = vadd.f32 %v258_v40, %v173_v39  ;;  %v647_v35 = vpop.permute.xlu1 %646 }
  0xb5   :  { %708 = vst.msk [vmem:[%s1286_s4 + $0xc] sm:$0xf] %vm704_vm1, %v687_v37  ;;  %v508_v41 = vadd.f32 %v1146_v55, %v484_v38 }
  0xb7   :  { %v528_v43 = vmax.f32 %v508_v41, 0.0 }
  0xb9   :  { %v668_v46 = vmul.f32 %v587_v28, %v528_v43  ;;  %v288_v47 = vpop.f32.mrf.mxu3 }
  0xba   :  { %v442_v48 = vpop.f32.mrf.mxu2  ;;  %v176_v51 = vpop.f32.mrf.mxu0  ;;  %v289_v38 = vadd.f32 %v288_v47, %v1149_v1 }
  0xbb   :  { %v688_v49 = vpack.c.bf16 %v668_v46, %v668_v46  ;;  %v485_v50 = vadd.f32 %v442_v48, %v259_v45  ;;  %v261_v52 = vpop.f32.mrf.mxu1  ;;  %v1221_v1 = vpop.permute.xlu0 %641 }
  0xbc   :  { %v262_v57 = vadd.f32 %v261_v52, %v176_v51  ;;  %v652_v52 = vpop.permute.xlu2 %651 }
  0xbd   :  { %709 = vst.msk [vmem:[%s1286_s4 + $0x10] sm:$0xf] %vm704_vm1, %v688_v49  ;;  %v509_v53 = vadd.f32 %v1146_v55, %v485_v50 }
  0xbf   :  { %v529_v58 = vmax.f32 %v509_v53, 0.0 }
  0xc1   :  { %v669_v60 = vmul.f32 %v592_v42, %v529_v58  ;;  %v1180_v61 = vpop.f32.mrf.mxu3 }
  0xc2   :  { %v445_v63 = vpop.f32.mrf.mxu2  ;;  %v178_v3 = vpop.f32.mrf.mxu0  ;;  %v292_v58 = vadd.f32 %v1180_v61, %v1156_v12 }
  0xc3   :  { %v689_v0 = vpack.c.bf16 %v669_v60, %v669_v60  ;;  %v486_v2 = vadd.f32 %v445_v63, %v262_v57  ;;  %v263_v4 = vpop.f32.mrf.mxu1 }
  0xc4   :  { %v264_v9 = vadd.f32 %v263_v4, %v178_v3 }
  0xc5   :  { %710 = vst.msk [vmem:[%s1286_s4 + $0x14] sm:$0xf] %vm704_vm1, %v689_v0  ;;  %v510_v5 = vadd.f32 %v1146_v55, %v486_v2 }
  0xc7   :  { %v530_v6 = vmax.f32 %v510_v5, 0.0 }
  0xc9   :  { %v670_v8 = vmul.f32 %v597_v56, %v530_v6  ;;  %v1189_v10 = vpop.f32.mrf.mxu3 }
  0xca   :  { %v447_v13 = vpop.f32.mrf.mxu2  ;;  %v181_v16 = vpop.f32.mrf.mxu0 }
  0xcb   :  { %v690_v14 = vpack.c.bf16 %v670_v8, %v670_v8  ;;  %v487_v15 = vadd.f32 %v447_v13, %v264_v9  ;;  %v266_v18 = vpop.f32.mrf.mxu1 }
  0xcc   :  { %v267_v21 = vadd.f32 %v266_v18, %v181_v16 }
  0xcd   :  { %711 = vst.msk [vmem:[%s1286_s4 + $0x18] sm:$0xf] %vm704_vm1, %v690_v14  ;;  %v511_v19 = vadd.f32 %v1146_v55, %v487_v15  ;;  %v294_v14 = vadd.f32 %v1189_v10, %v1163_v23  ;;  %v662_v10 = vpop.permute.xlu1 %661 }
  0xcf   :  { %v531_v20 = vmax.f32 %v511_v19, 0.0 }
  0xd1   :  { %v671_v24 = vmul.f32 %v602_v44, %v531_v20  ;;  %v470_v25 = vpop.f32.mrf.mxu3 }
  0xd2   :  { %v450_v27 = vpop.f32.mrf.mxu2  ;;  %v496_v28 = vadd.f32 %v470_v25, %v287_v22  ;;  %v183_v31 = vpop.f32.mrf.mxu0 }
  0xd3   :  { %v691_v29 = vpack.c.bf16 %v671_v24, %v671_v24  ;;  %v488_v30 = vadd.f32 %v450_v27, %v267_v21  ;;  %v268_v34 = vpop.f32.mrf.mxu1 }
  0xd4   :  { %v520_v33 = vadd.f32 %v1146_v55, %v496_v28  ;;  %v269_v41 = vadd.f32 %v268_v34, %v183_v31 }
  0xd5   :  { %712 = vst.msk [vmem:[%s1286_s4 + $0x1c] sm:$0xf] %vm704_vm1, %v691_v29  ;;  %v512_v54 = vadd.f32 %v1146_v55, %v488_v30 }
  0xd6   :  { %v540_v36 = vmax.f32 %v520_v33, 0.0 }
  0xd7   :  { %v532_v37 = vmax.f32 %v512_v54, 0.0 }
  0xd8   :  { %v680_v39 = vmul.f32 %v647_v35, %v540_v36 }
  0xd9   :  { %v672_v40 = vmul.f32 %v607_v59, %v532_v37  ;;  %v472_v42 = vpop.f32.mrf.mxu3 }
  0xda   :  { %v700_v43 = vpack.c.bf16 %v680_v39, %v680_v39  ;;  %v452_v44 = vpop.f32.mrf.mxu2  ;;  %v497_v45 = vadd.f32 %v472_v42, %v289_v38  ;;  %v186_v49 = vpop.f32.mrf.mxu0 }
  0xdb   :  { %v692_v46 = vpack.c.bf16 %v672_v40, %v672_v40  ;;  %v489_v48 = vadd.f32 %v452_v44, %v269_v41  ;;  %v271_v51 = vpop.f32.mrf.mxu1 }
  0xdc   :  { %721 = vst.msk [vmem:[%s1286_s4 + $0x40] sm:$0xf] %vm704_vm1, %v700_v43  ;;  %v521_v50 = vadd.f32 %v1146_v55, %v497_v45  ;;  %v272_v57 = vadd.f32 %v271_v51, %v186_v49 }
  0xdd   :  { %713 = vst.msk [vmem:[%s1286_s4 + $0x20] sm:$0xf] %vm704_vm1, %v692_v46  ;;  %v513_v47 = vadd.f32 %v1146_v55, %v489_v48 }
  0xde   :  { %v541_v53 = vmax.f32 %v521_v50, 0.0 }
  0xdf   :  { %v533_v56 = vmax.f32 %v513_v47, 0.0 }
  0xe0   :  { %v681_v59 = vmul.f32 %v652_v52, %v541_v53 }
  0xe1   :  { %v673_v60 = vmul.f32 %v612_v7, %v533_v56  ;;  %v475_v63 = vpop.f32.mrf.mxu3  ;;  %v657_v7 = vpop.permute.xlu0 %656 }
  0xe2   :  { %v701_v0 = vpack.c.bf16 %v681_v59, %v681_v59  ;;  %v455_v2 = vpop.f32.mrf.mxu2  ;;  %v498_v3 = vadd.f32 %v475_v63, %v292_v58  ;;  %v188_v6 = vpop.f32.mrf.mxu0 }
  0xe3   :  { %v693_v4 = vpack.c.bf16 %v673_v60, %v673_v60  ;;  %v490_v5 = vadd.f32 %v455_v2, %v272_v57  ;;  %v273_v9 = vpop.f32.mrf.mxu1 }
  0xe4   :  { %722 = vst.msk [vmem:[%s1286_s4 + $0x44] sm:$0xf] %vm704_vm1, %v701_v0  ;;  %v522_v8 = vadd.f32 %v1146_v55, %v498_v3  ;;  %v274_v18 = vadd.f32 %v273_v9, %v188_v6 }
  0xe5   :  { %714 = vst.msk [vmem:[%s1286_s4 + $0x24] sm:$0xf] %vm704_vm1, %v693_v4  ;;  %v514_v12 = vadd.f32 %v1146_v55, %v490_v5 }
  0xe6   :  { %v542_v61 = vmax.f32 %v522_v8, 0.0 }
  0xe7   :  { %v534_v13 = vmax.f32 %v514_v12, 0.0 }
  0xe8   :  { %v682_v15 = vmul.f32 %v657_v7, %v542_v61 }
  0xe9   :  { %v674_v16 = vmul.f32 %v1182_v62, %v534_v13  ;;  %v477_v19 = vpop.f32.mrf.mxu3 }
  0xea   :  { %v702_v20 = vpack.c.bf16 %v682_v15, %v682_v15  ;;  %v457_v21 = vpop.f32.mrf.mxu2  ;;  %v499_v22 = vadd.f32 %v477_v19, %v294_v14  ;;  %v191_v27 = vpop.f32.mrf.mxu0 }
  0xeb   :  { %v694_v24 = vpack.c.bf16 %v674_v16, %v674_v16  ;;  %v491_v25 = vadd.f32 %v457_v21, %v274_v18  ;;  %v276_v29 = vpop.f32.mrf.mxu1 }
  0xec   :  { %723 = vst.msk [vmem:[%s1286_s4 + $0x48] sm:$0xf] %vm704_vm1, %v702_v20  ;;  %v523_v28 = vadd.f32 %v1146_v55, %v499_v22  ;;  %v277_v31 = vadd.f32 %v276_v29, %v191_v27 }
  0xed   :  { %715 = vst.msk [vmem:[%s1286_s4 + $0x28] sm:$0xf] %vm704_vm1, %v694_v24  ;;  %v515_v23 = vadd.f32 %v1146_v55, %v491_v25 }
  0xee   :  { %v543_v62 = vmax.f32 %v523_v28, 0.0 }
  0xef   :  { %v535_v30 = vmax.f32 %v515_v23, 0.0 }
  0xf0   :  { %v683_v33 = vmul.f32 %v662_v10, %v543_v62 }
  0xf1   :  { %v675_v34 = vmul.f32 %v1191_v11, %v535_v30 }
  0xf2   :  { %v703_v54 = vpack.c.bf16 %v683_v33, %v683_v33  ;;  %v460_v35 = vpop.f32.mrf.mxu2  ;;  %v193_v38 = vpop.f32.mrf.mxu0 }
  0xf3   :  { %v695_v36 = vpack.c.bf16 %v675_v34, %v675_v34  ;;  %v492_v37 = vadd.f32 %v460_v35, %v277_v31  ;;  %v278_v39 = vpop.f32.mrf.mxu1 }
  0xf4   :  { %724 = vst.msk [vmem:[%s1286_s4 + $0x4c] sm:$0xf] %vm704_vm1, %v703_v54  ;;  %v279_v42 = vadd.f32 %v278_v39, %v193_v38 }
  0xf5   :  { %716 = vst.msk [vmem:[%s1286_s4 + $0x2c] sm:$0xf] %vm704_vm1, %v695_v36  ;;  %v516_v40 = vadd.f32 %v1146_v55, %v492_v37 }
  0xf7   :  { %v536_v41 = vmax.f32 %v516_v40, 0.0 }
  0xf9   :  { %v676_v11 = vmul.f32 %v1201_v26, %v536_v41 }
  0xfa   :  { %v462_v43 = vpop.f32.mrf.mxu2  ;;  %v196_v46 = vpop.f32.mrf.mxu0 }
  0xfb   :  { %v696_v44 = vpack.c.bf16 %v676_v11, %v676_v11  ;;  %v493_v45 = vadd.f32 %v462_v43, %v279_v42  ;;  %v281_v48 = vpop.f32.mrf.mxu1 }
  0xfc   :  { %v282_v51 = vadd.f32 %v281_v48, %v196_v46 }
  0xfd   :  { %717 = vst.msk [vmem:[%s1286_s4 + $0x30] sm:$0xf] %vm704_vm1, %v696_v44  ;;  %v517_v49 = vadd.f32 %v1146_v55, %v493_v45 }
  0xff   :  { %v537_v50 = vmax.f32 %v517_v49, 0.0 }
 0x101   :  { %v677_v47 = vmul.f32 %v1193_v17, %v537_v50 }
 0x102   :  { %v465_v52 = vpop.f32.mrf.mxu2  ;;  %v198_v57 = vpop.f32.mrf.mxu0 }
 0x103   :  { %v697_v53 = vpack.c.bf16 %v677_v47, %v677_v47  ;;  %v494_v26 = vadd.f32 %v465_v52, %v282_v51  ;;  %v283_v58 = vpop.f32.mrf.mxu1 }
 0x104   :  { %v284_v63 = vadd.f32 %v283_v58, %v198_v57 }
 0x105   :  { %718 = vst.msk [vmem:[%s1286_s4 + $0x34] sm:$0xf] %vm704_vm1, %v697_v53  ;;  %v518_v56 = vadd.f32 %v1146_v55, %v494_v26 }
 0x107   :  { %v538_v59 = vmax.f32 %v518_v56, 0.0 }
 0x109   :  { %v678_v60 = vmul.f32 %v1203_v32, %v538_v59 }
 0x10a   :  { %v467_v0 = vpop.f32.mrf.mxu2 }
 0x10b   :  { %v698_v2 = vpack.c.bf16 %v678_v60, %v678_v60  ;;  %v495_v3 = vadd.f32 %v467_v0, %v284_v63 }
 0x10d   :  { %719 = vst.msk [vmem:[%s1286_s4 + $0x38] sm:$0xf] %vm704_vm1, %v698_v2  ;;  %v519_v17 = vadd.f32 %v1146_v55, %v495_v3 }
 0x10f   :  { %v539_v4 = vmax.f32 %v519_v17, 0.0 }
 0x111   :  { %v679_v5 = vmul.f32 %v1221_v1, %v539_v4 }
 0x113   :  { %v699_v6 = vpack.c.bf16 %v679_v5, %v679_v5 }
 0x115   :  { %720 = vst.msk [vmem:[%s1286_s4 + $0x3c] sm:$0xf] %vm704_vm1, %v699_v6 }

</bundles_post_ra>
